<compile_context>
chip_gen: v7x
topology: tpu7x:2x2x1
jax: 0.10.0
libtpu: 0.0.40
codegen_flags: <defaults>
</compile_context>

<pallas_src>
import functools

import numpy as np
import jax
import jax.numpy as jnp
from jax.experimental import pallas as pl
from jax.experimental.pallas import tpu as pltpu

N_LABELS = 4
GROUPS = ("1g", "1a", "2g", "2a")   # torch concat order: (x1g, x1a, x2g, x2a)


# ------------------------------ fused kernel ---------------------------------

def _fused_forward_kernel(*refs, B, L, conv_meta, n_lin):
    """refs = (x_rows, dft, [sel, w, b] * n_conv, [w, b] * n_lin, w_f, b_f, out).

    x_rows: (B*L, 6)  row index = b*L + t, cols = (gyro x/y/z, accel x/y/z)
    dft:    (2*B*L, B*L) stacked [cos; -sin], block-diagonal over the batch
    sel_i:  (k_i*B*Lout_i, B*Lin_i) 0/1 tap-selection matrices (stacked on taps)
    w_i/b_i: block-diagonal (over the 4 groups) layer weights / biases
    """
    n_conv = len(conv_meta)
    it = iter(refs)
    x_ref = next(it)
    dft_ref = next(it)
    conv_refs = [(next(it), next(it), next(it)) for _ in range(n_conv)]
    lin_refs = [(next(it), next(it)) for _ in range(n_lin)]
    wf_ref = next(it)
    bf_ref = next(it)
    o_ref = next(it)

    BL = B * L
    x = x_ref[...]                                     # (B*L, 6)
    G = x[:, 0:3]
    A = x[:, 3:6]
    g = jnp.sqrt(jnp.sum(G * G, axis=1, keepdims=True))
    a = jnp.sqrt(jnp.sum(A * A, axis=1, keepdims=True))
    x1 = jnp.concatenate([G, g, A, a], axis=1)         # (B*L, 8)

    # |FFT| along time: ONE matmul with the stacked batch-block-diag [cos; -sin].
    ri = jnp.dot(dft_ref[...], x1, preferred_element_type=jnp.float32)  # (2BL, 8)
    re = ri[:BL, :]
    im = ri[BL:, :]
    x2 = jnp.sqrt(re * re + im * im)                   # (B*L, 8)

    # 16 channels already ordered as the 4 groups (1g|1a|2g|2a), 4 channels each.
    h = jnp.concatenate([x1, x2], axis=1)              # (B*L, 16)

    # Conv stack: im2col per tap via constant selection matmuls, then one GEMM
    # against the block-diagonal (over groups) conv weights.  ReLU fused.
    for (sel_ref, w_ref, b_ref), (ksz, _stride, l_out) in zip(conv_refs, conv_meta):
        rows_out = B * l_out
        taps = [
            jnp.dot(sel_ref[pl.ds(kk * rows_out, rows_out), :], h,
                    preferred_element_type=jnp.float32)
            for kk in range(ksz)
        ]
        p = jnp.concatenate(taps, axis=1)              # (B*l_out, ksz * C_in_total)
        h = jnp.maximum(
            jnp.dot(p, w_ref[...], preferred_element_type=jnp.float32) + b_ref[...],
            0.0)
    # Conv stack ends at length 1 -> h is (B, 4*f) == the torch .view(-1, f)
    # of all four groups, horizontally concatenated in group order.

    for (w_ref, b_ref) in lin_refs:
        h = jnp.maximum(
            jnp.dot(h, w_ref[...], preferred_element_type=jnp.float32) + b_ref[...],
            0.0)

    o_ref[...] = (jnp.dot(h, wf_ref[...], preferred_element_type=jnp.float32)
                  + bf_ref[...])


# ------------------------ parameter init & packing ---------------------------

def init_params(key, K):
    """Synthetic parameters mirroring cnn_har_model.__init__ (PyTorch layouts)."""
    c = 4
    _, f0 = K[0]
    conv_shapes, i, fin, fout = [], 1, c, f0
    while isinstance(K[i], (list, tuple)):
        k, stride = K[i]
        i += 1
        conv_shapes.append((fin, fout, k, stride))
        fin, fout = fout, fout * 2
    f = fin
    lin_shapes, n1 = [], f
    while i < len(K):
        n2 = K[i]
        i += 1
        lin_shapes.append((n1, n2))
        n1 = n2

    convs = {g: [] for g in GROUPS}
    lins = {g: [] for g in GROUPS}
    for (ci, co, k, stride) in conv_shapes:
        for g in GROUPS:
            key, k1, k2 = jax.random.split(key, 3)
            w = jax.random.normal(k1, (co, ci, k), jnp.float32) * 0.2   # Conv1d (out,in,k)
            b = jax.random.normal(k2, (co,), jnp.float32) * 0.1
            convs[g].append((w, b, stride))
    for (n_in, n_out) in lin_shapes:
        for g in GROUPS:
            key, k1, k2 = jax.random.split(key, 3)
            w = jax.random.normal(k1, (n_out, n_in), jnp.float32) * 0.2  # Linear (out,in)
            b = jax.random.normal(k2, (n_out,), jnp.float32) * 0.1
            lins[g].append((w, b))
    key, k1, k2 = jax.random.split(key, 3)
    fw = jax.random.normal(k1, (N_LABELS, n1 * 4), jnp.float32) * 0.2
    fb = jax.random.normal(k2, (N_LABELS,), jnp.float32) * 0.1
    return dict(conv=convs, lin=lins, final=(fw, fb), f=f)


def _np_block_diag(mats):
    r = sum(m.shape[0] for m in mats)
    c = sum(m.shape[1] for m in mats)
    out = np.zeros((r, c), np.float32)
    ro = co = 0
    for m in mats:
        out[ro:ro + m.shape[0], co:co + m.shape[1]] = m
        ro += m.shape[0]
        co += m.shape[1]
    return out


def pack_model(params, B, L):
    """One-time host-side packing of weights into the fused kernel's layouts."""
    n_conv = len(params["conv"][GROUPS[0]])
    n_lin = len(params["lin"][GROUPS[0]])

    # Stacked [cos; -sin] DFT matrix, block-diagonal over the batch, so the DFT
    # along time is a single left-matmul on the (B*L, C) activation slab.
    t = np.arange(L)
    ang = 2.0 * np.pi * np.outer(t, t) / L
    eye_b = np.eye(B, dtype=np.float32)
    dft = np.concatenate([np.kron(eye_b, np.cos(ang).astype(np.float32)),
                          np.kron(eye_b, (-np.sin(ang)).astype(np.float32))],
                         axis=0)                               # (2*B*L, B*L)

    conv_packed, conv_meta = [], []
    l_in = L
    for li in range(n_conv):
        w0, _, stride = params["conv"][GROUPS[0]][li]
        cout, cin, ksz = w0.shape
        l_out = (l_in - ksz) // stride + 1
        # 0/1 tap-selection matrices (stacked over taps): row (kk, b, t) picks
        # activation row b*l_in + t*stride + kk.
        sel = np.zeros((ksz * B * l_out, B * l_in), np.float32)
        for kk in range(ksz):
            for b in range(B):
                for tt in range(l_out):
                    sel[kk * B * l_out + b * l_out + tt,
                        b * l_in + tt * stride + kk] = 1.0
        # Conv weights: per tap, block-diagonal over the 4 groups; taps stacked
        # along rows so they line up with the concat-of-taps im2col columns.
        blocks = []
        for kk in range(ksz):
            blocks.append(_np_block_diag(
                [np.asarray(params["conv"][g][li][0])[:, :, kk].T for g in GROUPS]))
        w_bd = np.concatenate(blocks, axis=0)                  # (ksz*4*cin, 4*cout)
        b_bd = np.concatenate(
            [np.asarray(params["conv"][g][li][1]) for g in GROUPS])[None, :]
        conv_packed.append((jnp.asarray(sel), jnp.asarray(w_bd), jnp.asarray(b_bd)))
        conv_meta.append((ksz, stride, l_out))
        l_in = l_out
    # torch .view(-1, f) assumption of the model: conv stack must end at length 1.
    assert l_in == 1, f"conv stack must reduce length to 1, got {l_in}"

    lin_packed = []
    for li in range(n_lin):
        w_bd = _np_block_diag(
            [np.asarray(params["lin"][g][li][0]).T for g in GROUPS])
        b_bd = np.concatenate(
            [np.asarray(params["lin"][g][li][1]) for g in GROUPS])[None, :]
        lin_packed.append((jnp.asarray(w_bd), jnp.asarray(b_bd)))

    fw, fb = params["final"]
    return dict(B=B, L=L, dft=jnp.asarray(dft),
                conv=conv_packed, conv_meta=tuple(conv_meta),
                lin=lin_packed,
                final_w=jnp.asarray(np.asarray(fw).T),
                final_b=jnp.asarray(np.asarray(fb))[None, :])


def build_forward(packed):
    B, L = packed["B"], packed["L"]
    conv_meta = packed["conv_meta"]
    n_lin = len(packed["lin"])

    const_inputs = [packed["dft"]]
    for sel, w, b in packed["conv"]:
        const_inputs += [sel, w, b]
    for w, b in packed["lin"]:
        const_inputs += [w, b]
    const_inputs += [packed["final_w"], packed["final_b"]]

    kernel = functools.partial(_fused_forward_kernel, B=B, L=L,
                               conv_meta=conv_meta, n_lin=n_lin)
    vmem = pl.BlockSpec(memory_space=pltpu.MemorySpace.VMEM)
    call = pl.pallas_call(
        kernel,
        out_shape=jax.ShapeDtypeStruct((B, N_LABELS), jnp.float32),
        in_specs=[vmem] * (1 + len(const_inputs)),
        out_specs=vmem,
    )

    @jax.jit
    def forward(x):
        assert x.shape == (B, 6, L)
        # Rows layout: row index = b*L + t, cols = raw channels (3 gyro, 3 accel).
        x_rows = jnp.transpose(x, (0, 2, 1)).reshape(B * L, 6).astype(jnp.float32)
        return call(x_rows, *const_inputs)

    return forward


# --------------------------- pure-JAX reference ------------------------------

def _ref_conv1d_relu(x, w, b, stride):
    _, _, l_in = x.shape
    _, _, k = w.shape
    l_out = (l_in - k) // stride + 1
    cols = jnp.stack([x[:, :, t * stride:t * stride + k] for t in range(l_out)],
                     axis=2)                            # (B, cin, l_out, k)
    y = jnp.einsum("bclk,ock->bol", cols, w) + b[None, :, None]
    return jnp.maximum(y, 0.0)


def _ref_forward(params, x):
    """Straight port of cnn_har_model.forward (+ preproc) in plain JAX."""
    G, A = x[:, :3, :], x[:, 3:, :]
    g = jnp.sqrt(jnp.sum(G * G, axis=1, keepdims=True))
    a = jnp.sqrt(jnp.sum(A * A, axis=1, keepdims=True))
    x1 = jnp.concatenate([G, g, A, a], axis=1)
    x2 = jnp.abs(jnp.fft.fft(x1, axis=-1)).astype(jnp.float32)  # rfft onesided=False + norm
    xp = jnp.concatenate([x1, x2], axis=1)              # (B, 16, L)
    c = 4
    outs = []
    for gi, gname in enumerate(GROUPS):
        h = xp[:, gi * c:(gi + 1) * c, :]
        for (w, b, stride) in params["conv"][gname]:
            h = _ref_conv1d_relu(h, w, b, stride)
        h = h.reshape(h.shape[0], -1)                   # (B, f): length is 1 here
        for (w, b) in params["lin"][gname]:
            h = jnp.maximum(h @ w.T + b, 0.0)
        outs.append(h)
    h = jnp.concatenate(outs, axis=1)
    fw, fb = params["final"]
    return h @ fw.T + fb


# ------------------------------------ main ------------------------------------

if __name__ == "__main__":
    # K = [(win, f0), (kernel, stride), (kernel, stride), lin1, lin2]
    # Conv stack: (4->8, k=5, s=3) then (8->16, k=4, s=1); with L=16 the output
    # length is exactly 1, matching the model's .view(-1, f) assumption.
    K = [(16, 8), (5, 3), (4, 1), 16, 32]
    B, L = 2, 16

    key = jax.random.PRNGKey(0)
    key, xk, pk = jax.random.split(key, 3)
    x = jax.random.normal(xk, (B, 6, L), jnp.float32)   # 3 gyro + 3 accel channels
    params = init_params(pk, K)

    packed = pack_model(params, B=B, L=L)
    fwd = build_forward(packed)

    out = jax.block_until_ready(fwd(x))
    assert out.shape == (B, N_LABELS) and out.dtype == jnp.float32

    # Numerical check against a plain-JAX port of the PyTorch forward.
    with jax.default_matmul_precision("highest"):
        ref = jax.block_until_ready(_ref_forward(params, x))
    np.testing.assert_allclose(np.asarray(out), np.asarray(ref), rtol=5e-2, atol=5e-2)

    print("KERNEL_OK")
</pallas_src>

<mosaic_0001>
module attributes {stable_mosaic.version = 11 : i64} {
  func.func @_fused_forward_kernel(%arg0: memref<32x6xf32, #tpu.memory_space<vmem>>, %arg1: memref<64x32xf32, #tpu.memory_space<vmem>>, %arg2: memref<40x32xf32, #tpu.memory_space<vmem>>, %arg3: memref<80x32xf32, #tpu.memory_space<vmem>>, %arg4: memref<1x32xf32, #tpu.memory_space<vmem>>, %arg5: memref<8x8xf32, #tpu.memory_space<vmem>>, %arg6: memref<128x64xf32, #tpu.memory_space<vmem>>, %arg7: memref<1x64xf32, #tpu.memory_space<vmem>>, %arg8: memref<64x64xf32, #tpu.memory_space<vmem>>, %arg9: memref<1x64xf32, #tpu.memory_space<vmem>>, %arg10: memref<64x128xf32, #tpu.memory_space<vmem>>, %arg11: memref<1x128xf32, #tpu.memory_space<vmem>>, %arg12: memref<128x4xf32, #tpu.memory_space<vmem>>, %arg13: memref<1x4xf32, #tpu.memory_space<vmem>>, %arg14: memref<2x4xf32, #tpu.memory_space<vmem>>) attributes {dimension_semantics = [], scalar_prefetch = 0 : i64, scratch_operands = 0 : i64, tpu.core_type = #tpu.core_type<tc>} {
    %c0 = arith.constant 0 : index
    %c0_0 = arith.constant 0 : index
    %0 = vector.load %arg0[%c0, %c0_0] : memref<32x6xf32, #tpu.memory_space<vmem>>, vector<32x6xf32>
    %1 = vector.extract_strided_slice %0 {offsets = [0, 0], sizes = [32, 3], strides = [1, 1]} : vector<32x6xf32> to vector<32x3xf32>
    %2 = vector.extract_strided_slice %0 {offsets = [0, 3], sizes = [32, 3], strides = [1, 1]} : vector<32x6xf32> to vector<32x3xf32>
    %3 = arith.mulf %1, %1 : vector<32x3xf32>
    %cst = arith.constant dense<0.000000e+00> : vector<32xf32>
    %4 = vector.multi_reduction <add>, %3, %cst [1] : vector<32x3xf32> to vector<32xf32>
    %5 = vector.shape_cast %4 : vector<32xf32> to vector<32x1xf32>
    %6 = math.sqrt %5 : vector<32x1xf32>
    %7 = arith.mulf %2, %2 : vector<32x3xf32>
    %cst_1 = arith.constant dense<0.000000e+00> : vector<32xf32>
    %8 = vector.multi_reduction <add>, %7, %cst_1 [1] : vector<32x3xf32> to vector<32xf32>
    %9 = vector.shape_cast %8 : vector<32xf32> to vector<32x1xf32>
    %10 = math.sqrt %9 : vector<32x1xf32>
    %11 = tpu.concatenate %1, %6, %2, %10 in 1 : vector<32x3xf32>, vector<32x1xf32>, vector<32x3xf32>, vector<32x1xf32> -> vector<32x8xf32>
    %c0_2 = arith.constant 0 : index
    %c0_3 = arith.constant 0 : index
    %12 = vector.load %arg1[%c0_2, %c0_3] : memref<64x32xf32, #tpu.memory_space<vmem>>, vector<64x32xf32>
    %cst_4 = arith.constant dense<0.000000e+00> : vector<64x8xf32>
    %13 = tpu.matmul %12, %11, %cst_4 {dimension_numbers = #tpu.dot_dimension_numbers<[1], [0], [0], [1], [0, 0, 1, 1], [], []>} : vector<64x32xf32>, vector<32x8xf32>, vector<64x8xf32> -> vector<64x8xf32>
    %14 = vector.extract_strided_slice %13 {offsets = [0, 0], sizes = [32, 8], strides = [1, 1]} : vector<64x8xf32> to vector<32x8xf32>
    %15 = vector.extract_strided_slice %13 {offsets = [32, 0], sizes = [32, 8], strides = [1, 1]} : vector<64x8xf32> to vector<32x8xf32>
    %16 = arith.mulf %14, %14 : vector<32x8xf32>
    %17 = arith.mulf %15, %15 : vector<32x8xf32>
    %18 = arith.addf %16, %17 : vector<32x8xf32>
    %19 = math.sqrt %18 : vector<32x8xf32>
    %20 = tpu.concatenate %11, %19 in 1 : vector<32x8xf32>, vector<32x8xf32> -> vector<32x16xf32>
    %c0_5 = arith.constant 0 : index
    %c0_6 = arith.constant 0 : index
    %21 = vector.load %arg2[%c0_5, %c0_6] : memref<40x32xf32, #tpu.memory_space<vmem>>, vector<8x32xf32>
    %cst_7 = arith.constant dense<0.000000e+00> : vector<8x16xf32>
    %22 = tpu.matmul %21, %20, %cst_7 {dimension_numbers = #tpu.dot_dimension_numbers<[1], [0], [0], [1], [0, 0, 1, 1], [], []>} : vector<8x32xf32>, vector<32x16xf32>, vector<8x16xf32> -> vector<8x16xf32>
    %c8 = arith.constant 8 : index
    %c0_8 = arith.constant 0 : index
    %23 = vector.load %arg2[%c8, %c0_8] : memref<40x32xf32, #tpu.memory_space<vmem>>, vector<8x32xf32>
    %cst_9 = arith.constant dense<0.000000e+00> : vector<8x16xf32>
    %24 = tpu.matmul %23, %20, %cst_9 {dimension_numbers = #tpu.dot_dimension_numbers<[1], [0], [0], [1], [0, 0, 1, 1], [], []>} : vector<8x32xf32>, vector<32x16xf32>, vector<8x16xf32> -> vector<8x16xf32>
    %c16 = arith.constant 16 : index
    %c0_10 = arith.constant 0 : index
    %25 = vector.load %arg2[%c16, %c0_10] : memref<40x32xf32, #tpu.memory_space<vmem>>, vector<8x32xf32>
    %cst_11 = arith.constant dense<0.000000e+00> : vector<8x16xf32>
    %26 = tpu.matmul %25, %20, %cst_11 {dimension_numbers = #tpu.dot_dimension_numbers<[1], [0], [0], [1], [0, 0, 1, 1], [], []>} : vector<8x32xf32>, vector<32x16xf32>, vector<8x16xf32> -> vector<8x16xf32>
    %c24 = arith.constant 24 : index
    %c0_12 = arith.constant 0 : index
    %27 = vector.load %arg2[%c24, %c0_12] : memref<40x32xf32, #tpu.memory_space<vmem>>, vector<8x32xf32>
    %cst_13 = arith.constant dense<0.000000e+00> : vector<8x16xf32>
    %28 = tpu.matmul %27, %20, %cst_13 {dimension_numbers = #tpu.dot_dimension_numbers<[1], [0], [0], [1], [0, 0, 1, 1], [], []>} : vector<8x32xf32>, vector<32x16xf32>, vector<8x16xf32> -> vector<8x16xf32>
    %c32 = arith.constant 32 : index
    %c0_14 = arith.constant 0 : index
    %29 = vector.load %arg2[%c32, %c0_14] : memref<40x32xf32, #tpu.memory_space<vmem>>, vector<8x32xf32>
    %cst_15 = arith.constant dense<0.000000e+00> : vector<8x16xf32>
    %30 = tpu.matmul %29, %20, %cst_15 {dimension_numbers = #tpu.dot_dimension_numbers<[1], [0], [0], [1], [0, 0, 1, 1], [], []>} : vector<8x32xf32>, vector<32x16xf32>, vector<8x16xf32> -> vector<8x16xf32>
    %31 = tpu.concatenate %22, %24, %26, %28, %30 in 1 : vector<8x16xf32>, vector<8x16xf32>, vector<8x16xf32>, vector<8x16xf32>, vector<8x16xf32> -> vector<8x80xf32>
    %c0_16 = arith.constant 0 : index
    %c0_17 = arith.constant 0 : index
    %32 = vector.load %arg3[%c0_16, %c0_17] : memref<80x32xf32, #tpu.memory_space<vmem>>, vector<80x32xf32>
    %cst_18 = arith.constant dense<0.000000e+00> : vector<8x32xf32>
    %33 = tpu.matmul %31, %32, %cst_18 {dimension_numbers = #tpu.dot_dimension_numbers<[1], [0], [0], [1], [0, 0, 1, 1], [], []>} : vector<8x80xf32>, vector<80x32xf32>, vector<8x32xf32> -> vector<8x32xf32>
    %c0_19 = arith.constant 0 : index
    %c0_20 = arith.constant 0 : index
    %34 = vector.load %arg4[%c0_19, %c0_20] : memref<1x32xf32, #tpu.memory_space<vmem>>, vector<1x32xf32>
    %35 = vector.broadcast %34 : vector<1x32xf32> to vector<8x32xf32>
    %36 = arith.addf %33, %35 : vector<8x32xf32>
    %cst_21 = arith.constant 0.000000e+00 : f32
    %37 = vector.broadcast %cst_21 : f32 to vector<8x32xf32>
    %38 = arith.maximumf %36, %37 : vector<8x32xf32>
    %c0_22 = arith.constant 0 : index
    %c0_23 = arith.constant 0 : index
    %39 = vector.load %arg5[%c0_22, %c0_23] : memref<8x8xf32, #tpu.memory_space<vmem>>, vector<2x8xf32>
    %cst_24 = arith.constant dense<0.000000e+00> : vector<2x32xf32>
    %40 = tpu.matmul %39, %38, %cst_24 {dimension_numbers = #tpu.dot_dimension_numbers<[1], [0], [0], [1], [0, 0, 1, 1], [], []>} : vector<2x8xf32>, vector<8x32xf32>, vector<2x32xf32> -> vector<2x32xf32>
    %c2 = arith.constant 2 : index
    %c0_25 = arith.constant 0 : index
    %41 = vector.load %arg5[%c2, %c0_25] : memref<8x8xf32, #tpu.memory_space<vmem>>, vector<2x8xf32>
    %cst_26 = arith.constant dense<0.000000e+00> : vector<2x32xf32>
    %42 = tpu.matmul %41, %38, %cst_26 {dimension_numbers = #tpu.dot_dimension_numbers<[1], [0], [0], [1], [0, 0, 1, 1], [], []>} : vector<2x8xf32>, vector<8x32xf32>, vector<2x32xf32> -> vector<2x32xf32>
    %c4 = arith.constant 4 : index
    %c0_27 = arith.constant 0 : index
    %43 = vector.load %arg5[%c4, %c0_27] : memref<8x8xf32, #tpu.memory_space<vmem>>, vector<2x8xf32>
    %cst_28 = arith.constant dense<0.000000e+00> : vector<2x32xf32>
    %44 = tpu.matmul %43, %38, %cst_28 {dimension_numbers = #tpu.dot_dimension_numbers<[1], [0], [0], [1], [0, 0, 1, 1], [], []>} : vector<2x8xf32>, vector<8x32xf32>, vector<2x32xf32> -> vector<2x32xf32>
    %c6 = arith.constant 6 : index
    %c0_29 = arith.constant 0 : index
    %45 = vector.load %arg5[%c6, %c0_29] : memref<8x8xf32, #tpu.memory_space<vmem>>, vector<2x8xf32>
    %cst_30 = arith.constant dense<0.000000e+00> : vector<2x32xf32>
    %46 = tpu.matmul %45, %38, %cst_30 {dimension_numbers = #tpu.dot_dimension_numbers<[1], [0], [0], [1], [0, 0, 1, 1], [], []>} : vector<2x8xf32>, vector<8x32xf32>, vector<2x32xf32> -> vector<2x32xf32>
    %47 = tpu.concatenate %40, %42, %44, %46 in 1 : vector<2x32xf32>, vector<2x32xf32>, vector<2x32xf32>, vector<2x32xf32> -> vector<2x128xf32>
    %c0_31 = arith.constant 0 : index
    %c0_32 = arith.constant 0 : index
    %48 = vector.load %arg6[%c0_31, %c0_32] : memref<128x64xf32, #tpu.memory_space<vmem>>, vector<128x64xf32>
    %cst_33 = arith.constant dense<0.000000e+00> : vector<2x64xf32>
    %49 = tpu.matmul %47, %48, %cst_33 {dimension_numbers = #tpu.dot_dimension_numbers<[1], [0], [0], [1], [0, 0, 1, 1], [], []>} : vector<2x128xf32>, vector<128x64xf32>, vector<2x64xf32> -> vector<2x64xf32>
    %c0_34 = arith.constant 0 : index
    %c0_35 = arith.constant 0 : index
    %50 = vector.load %arg7[%c0_34, %c0_35] : memref<1x64xf32, #tpu.memory_space<vmem>>, vector<1x64xf32>
    %51 = vector.broadcast %50 : vector<1x64xf32> to vector<2x64xf32>
    %52 = arith.addf %49, %51 : vector<2x64xf32>
    %cst_36 = arith.constant 0.000000e+00 : f32
    %53 = vector.broadcast %cst_36 : f32 to vector<2x64xf32>
    %54 = arith.maximumf %52, %53 : vector<2x64xf32>
    %c0_37 = arith.constant 0 : index
    %c0_38 = arith.constant 0 : index
    %55 = vector.load %arg8[%c0_37, %c0_38] : memref<64x64xf32, #tpu.memory_space<vmem>>, vector<64x64xf32>
    %cst_39 = arith.constant dense<0.000000e+00> : vector<2x64xf32>
    %56 = tpu.matmul %54, %55, %cst_39 {dimension_numbers = #tpu.dot_dimension_numbers<[1], [0], [0], [1], [0, 0, 1, 1], [], []>} : vector<2x64xf32>, vector<64x64xf32>, vector<2x64xf32> -> vector<2x64xf32>
    %c0_40 = arith.constant 0 : index
    %c0_41 = arith.constant 0 : index
    %57 = vector.load %arg9[%c0_40, %c0_41] : memref<1x64xf32, #tpu.memory_space<vmem>>, vector<1x64xf32>
    %58 = vector.broadcast %57 : vector<1x64xf32> to vector<2x64xf32>
    %59 = arith.addf %56, %58 : vector<2x64xf32>
    %cst_42 = arith.constant 0.000000e+00 : f32
    %60 = vector.broadcast %cst_42 : f32 to vector<2x64xf32>
    %61 = arith.maximumf %59, %60 : vector<2x64xf32>
    %c0_43 = arith.constant 0 : index
    %c0_44 = arith.constant 0 : index
    %62 = vector.load %arg10[%c0_43, %c0_44] : memref<64x128xf32, #tpu.memory_space<vmem>>, vector<64x128xf32>
    %cst_45 = arith.constant dense<0.000000e+00> : vector<2x128xf32>
    %63 = tpu.matmul %61, %62, %cst_45 {dimension_numbers = #tpu.dot_dimension_numbers<[1], [0], [0], [1], [0, 0, 1, 1], [], []>} : vector<2x64xf32>, vector<64x128xf32>, vector<2x128xf32> -> vector<2x128xf32>
    %c0_46 = arith.constant 0 : index
    %c0_47 = arith.constant 0 : index
    %64 = vector.load %arg11[%c0_46, %c0_47] : memref<1x128xf32, #tpu.memory_space<vmem>>, vector<1x128xf32>
    %65 = vector.broadcast %64 : vector<1x128xf32> to vector<2x128xf32>
    %66 = arith.addf %63, %65 : vector<2x128xf32>
    %cst_48 = arith.constant 0.000000e+00 : f32
    %67 = vector.broadcast %cst_48 : f32 to vector<2x128xf32>
    %68 = arith.maximumf %66, %67 : vector<2x128xf32>
    %c0_49 = arith.constant 0 : index
    %c0_50 = arith.constant 0 : index
    %69 = vector.load %arg12[%c0_49, %c0_50] : memref<128x4xf32, #tpu.memory_space<vmem>>, vector<128x4xf32>
    %cst_51 = arith.constant dense<0.000000e+00> : vector<2x4xf32>
    %70 = tpu.matmul %68, %69, %cst_51 {dimension_numbers = #tpu.dot_dimension_numbers<[1], [0], [0], [1], [0, 0, 1, 1], [], []>} : vector<2x128xf32>, vector<128x4xf32>, vector<2x4xf32> -> vector<2x4xf32>
    %c0_52 = arith.constant 0 : index
    %c0_53 = arith.constant 0 : index
    %71 = vector.load %arg13[%c0_52, %c0_53] : memref<1x4xf32, #tpu.memory_space<vmem>>, vector<1x4xf32>
    %72 = vector.broadcast %71 : vector<1x4xf32> to vector<2x4xf32>
    %73 = arith.addf %70, %72 : vector<2x4xf32>
    %c0_54 = arith.constant 0 : index
    %c0_55 = arith.constant 0 : index
    %74 = vector.load %arg14[%c0_54, %c0_55] : memref<2x4xf32, #tpu.memory_space<vmem>>, vector<2x4xf32>
    tpu.vector_store %arg14[%c0_54, %c0_55], %73 {strides = array<i32>} : memref<2x4xf32, #tpu.memory_space<vmem>>, vector<2x4xf32>,
    return
  }
}

</mosaic_0001>

<bundles_post_ra>
// kernel: forward.1
= control target key start
LH: loop header
LB: loop body
LE: loop exit
PB: predicated region body
PF: predicated region fallthrough
CT: control target
= control target key end

     0   :  { %19 = vsyncpa [#allocation3], 0  ;;  %s2811_s0 = inlined_call_operand.vmem [shape: f32[32,6], index: 0, kind: input, shape index: {}]   ;;  %s2812_s1 = inlined_call_operand.hbm [shape: f32[64,32], index: 1, kind: input, shape index: {}]   ;;  %s2813_s2 = inlined_call_operand.hbm [shape: f32[40,32], index: 2, kind: input, shape index: {}]   ;;  %s2814_s3 = inlined_call_operand.hbm [shape: f32[80,32], index: 3, kind: input, shape index: {}]   ;;  %s2815_s4 = inlined_call_operand.vmem [shape: f32[1,32], index: 4, kind: input, shape index: {}]   ;;  %s2816_s5 = inlined_call_operand.vmem [shape: f32[8,8], index: 5, kind: input, shape index: {}]   ;;  %s2817_s6 = inlined_call_operand.hbm [shape: f32[128,64], index: 6, kind: input, shape index: {}]   ;;  %s2818_s7 = inlined_call_operand.vmem [shape: f32[1,64], index: 7, kind: input, shape index: {}]   ;;  %s2819_s8 = inlined_call_operand.hbm [shape: f32[64,64], index: 8, kind: input, shape index: {}]   ;;  %s2820_s9 = inlined_call_operand.vmem [shape: f32[1,64], index: 9, kind: input, shape index: {}]   ;;  %s2821_s10 = inlined_call_operand.vmem [shape: f32[64,128], index: 10, kind: input, shape index: {}]   ;;  %s2822_s11 = inlined_call_operand.vmem [shape: f32[1,128], index: 11, kind: input, shape index: {}]   ;;  %s2823_s12 = inlined_call_operand.hbm [shape: f32[128,4], index: 12, kind: input, shape index: {}]   ;;  %s2824_s13 = inlined_call_operand.vmem [shape: f32[1,4], index: 13, kind: input, shape index: {}]   ;;  %s2825_s14 = inlined_call_operand.hbm [shape: f32[2,4], index: 14, kind: output, shape index: {}]  }
   0x1   :  { %20 = vsyncpa [#allocation6], 0 }
   0x2   :  { %21 = vsyncpa [#allocation9], 0 }
   0x3   :  { %22 = vsyncpa [#allocation12], 0 }
   0x4   :  { %23 = vsyncpa [#allocation4], 0  ;;  %s2357_s29 = smov [#allocation5]   ;;  %s2358_s15 = smov [#allocation8]  }
   0x5   :  { %s43_s30 = sshll.u32 %s2357_s29, 4  ;;  %s71_s16 = sshll.u32 %s2358_s15, 4  ;;  %s44_s30 = int_to_ptr.vmem [resolvable:$true] %s43_s30  ;;  %s2451_s16 = int_to_ptr.vmem [resolvable:$true] %s71_s16 }
   0x6   :  { %s2193_s19 = scalar_lea.hbm %s2813_s2, 640 }
   0x7   :  { %p2194_p0 = scmp.ne.s32.totalorder %s2813_s2, %s2193_s19  ;;  %p2197_p1 = scmp.lt.u32.totalorder %s2193_s19, %s2813_s2 }
   0x9   :  { %p2199_p2 = pnand %p2197_p1, %p2194_p0 }
   0xb   :  { %2202 = shalt.err (!%p2199_p2)
}
   0xc   :  { %s2203_s24 = scalar_lea.vmem %s44_s30, 640  ;;  %p2208_p4 = scmp.lt.s32.totalorder %s44_s30, %s44_s30 }
   0xd   :  { %p2204_p3 = scmp.ne.s32.totalorder %s44_s30, %s2203_s24  ;;  %p2209_p5 = scmp.lt.s32.totalorder %s2203_s24, %s2203_s24 }
   0xf   :  { %p2210_p6 = por %p2209_p5, %p2208_p4 }
  0x11   :  { %p2211_p7 = pnand %p2210_p6, %p2204_p3 }
  0x13   :  { %2214 = shalt.err (!%p2211_p7)
}
  0x14   :  { %s2359_s25 = smov 128   ;;  %s2360_s26 = smov 8  }
  0x15   :  { %49 = dma.hbm_to_vmem [thread:$0]  %s2813_s2, 640, %s44_s30, [#allocation6], %s2359_s25, %s2359_s25, %s2360_s26  }
  0x16   :  { %s2215_s17 = scalar_lea.hbm %s2817_s6, 2048 }
  0x17   :  { %p2216_p8 = scmp.ne.s32.totalorder %s2817_s6, %s2215_s17  ;;  %p2219_p9 = scmp.lt.u32.totalorder %s2215_s17, %s2817_s6 }
  0x19   :  { %p2221_p10 = pnand %p2219_p9, %p2216_p8 }
  0x1b   :  { %2224 = shalt.err (!%p2221_p10)
}
  0x1c   :  { %s2225_s22 = scalar_lea.vmem %s2451_s16, 2048  ;;  %p2230_p12 = scmp.lt.s32.totalorder %s2451_s16, %s2451_s16 }
  0x1d   :  { %p2226_p11 = scmp.ne.s32.totalorder %s2451_s16, %s2225_s22  ;;  %p2231_p13 = scmp.lt.s32.totalorder %s2225_s22, %s2225_s22 }
  0x1f   :  { %p2232_p0 = por %p2231_p13, %p2230_p12 }
  0x21   :  { %p2233_p1 = pnand %p2232_p0, %p2226_p11 }
  0x23   :  { %2236 = shalt.err (!%p2233_p1)
}
  0x24   :  { %77 = dma.hbm_to_vmem [thread:$0]  %s2817_s6, 2048, %s2451_s16, [#allocation9], %s2359_s25, %s2359_s25, %s2360_s26  }
  0x25   :  { %s2361_s23 = smov [#allocation2]   ;;  %s2362_s27 = smov [#allocation7]  }
  0x26   :  { %s31_s24 = sshll.u32 %s2361_s23, 4  ;;  %s55_s28 = sshll.u32 %s2362_s27, 4  ;;  %s32_s24 = int_to_ptr.vmem [resolvable:$true] %s31_s24  ;;  %s2488_s28 = int_to_ptr.vmem [resolvable:$true] %s55_s28 }
  0x27   :  { %s2237_s17 = scalar_lea.hbm %s2812_s1, 1024 }
  0x28   :  { %p2238_p2 = scmp.ne.s32.totalorder %s2812_s1, %s2237_s17  ;;  %p2241_p3 = scmp.lt.u32.totalorder %s2237_s17, %s2812_s1 }
  0x2a   :  { %p2243_p4 = pnand %p2241_p3, %p2238_p2 }
  0x2c   :  { %2246 = shalt.err (!%p2243_p4)
}
  0x2d   :  { %s2247_s6 = scalar_lea.vmem %s32_s24, 1024  ;;  %p2252_p6 = scmp.lt.s32.totalorder %s32_s24, %s32_s24 }
  0x2e   :  { %p2248_p5 = scmp.ne.s32.totalorder %s32_s24, %s2247_s6  ;;  %p2253_p7 = scmp.lt.s32.totalorder %s2247_s6, %s2247_s6 }
  0x30   :  { %p2254_p8 = por %p2253_p7, %p2252_p6 }
  0x32   :  { %p2255_p9 = pnand %p2254_p8, %p2248_p5 }
  0x34   :  { %2258 = shalt.err (!%p2255_p9)
}
  0x35   :  { %37 = dma.hbm_to_vmem [thread:$0]  %s2812_s1, 1024, %s32_s24, [#allocation3], %s2359_s25, %s2359_s25, %s2360_s26  }
  0x36   :  { %s2259_s23 = scalar_lea.hbm %s2814_s3, 1280 }
  0x37   :  { %p2260_p10 = scmp.ne.s32.totalorder %s2814_s3, %s2259_s23  ;;  %p2263_p11 = scmp.lt.u32.totalorder %s2259_s23, %s2814_s3 }
  0x39   :  { %p2265_p12 = pnand %p2263_p11, %p2260_p10 }
  0x3b   :  { %2268 = shalt.err (!%p2265_p12)
}
  0x3c   :  { %s2269_s18 = scalar_lea.vmem %s2488_s28, 1280  ;;  %p2274_p0 = scmp.lt.s32.totalorder %s2488_s28, %s2488_s28 }
  0x3d   :  { %p2270_p13 = scmp.ne.s32.totalorder %s2488_s28, %s2269_s18  ;;  %p2275_p1 = scmp.lt.s32.totalorder %s2269_s18, %s2269_s18 }
  0x3f   :  { %p2276_p2 = por %p2275_p1, %p2274_p0 }
  0x41   :  { %p2277_p3 = pnand %p2276_p2, %p2270_p13 }
  0x43   :  { %2280 = shalt.err (!%p2277_p3)
}
  0x44   :  { %61 = dma.hbm_to_vmem [thread:$0]  %s2814_s3, 1280, %s2488_s28, [#allocation6], %s2359_s25, %s2359_s25, %s2360_s26  }
  0x45   :  { %s2363_s19 = smov [#allocation10]   ;;  %s2364_s21 = smov [#allocation11]  }
  0x46   :  { %s85_s20 = sshll.u32 %s2363_s19, 4  ;;  %s103_s6 = sshll.u32 %s2364_s21, 4  ;;  %s86_s20 = int_to_ptr.vmem [resolvable:$true] %s85_s20  ;;  %s2525_s6 = int_to_ptr.vmem [resolvable:$true] %s103_s6 }
  0x47   :  { %s2281_s2 = scalar_lea.hbm %s2819_s8, 1024 }
  0x48   :  { %p2282_p4 = scmp.ne.s32.totalorder %s2819_s8, %s2281_s2  ;;  %p2285_p5 = scmp.lt.u32.totalorder %s2281_s2, %s2819_s8 }
  0x4a   :  { %p2287_p6 = pnand %p2285_p5, %p2282_p4 }
  0x4c   :  { %2290 = shalt.err (!%p2287_p6)
}
  0x4d   :  { %s2291_s3 = scalar_lea.vmem %s86_s20, 1024  ;;  %p2296_p8 = scmp.lt.s32.totalorder %s86_s20, %s86_s20 }
  0x4e   :  { %p2292_p7 = scmp.ne.s32.totalorder %s86_s20, %s2291_s3  ;;  %p2297_p9 = scmp.lt.s32.totalorder %s2291_s3, %s2291_s3 }
  0x50   :  { %p2298_p10 = por %p2297_p9, %p2296_p8 }
  0x52   :  { %p2299_p11 = pnand %p2298_p10, %p2292_p7 }
  0x54   :  { %2302 = shalt.err (!%p2299_p11)
}
  0x55   :  { %91 = dma.hbm_to_vmem [thread:$0]  %s2819_s8, 1024, %s86_s20, [#allocation9], %s2359_s25, %s2359_s25, %s2360_s26  }
  0x56   :  { %s2303_s1 = scalar_lea.hbm %s2823_s12, 2048 }
  0x57   :  { %p2304_p12 = scmp.ne.s32.totalorder %s2823_s12, %s2303_s1  ;;  %p2307_p13 = scmp.lt.u32.totalorder %s2303_s1, %s2823_s12 }
  0x59   :  { %p2309_p0 = pnand %p2307_p13, %p2304_p12 }
  0x5b   :  { %2312 = shalt.err (!%p2309_p0)
}
  0x5c   :  { %s2313_s22 = scalar_lea.vmem %s2525_s6, 2048  ;;  %p2318_p2 = scmp.lt.s32.totalorder %s2525_s6, %s2525_s6 }
  0x5d   :  { %p2314_p1 = scmp.ne.s32.totalorder %s2525_s6, %s2313_s22  ;;  %p2319_p3 = scmp.lt.s32.totalorder %s2313_s22, %s2313_s22 }
  0x5f   :  { %p2320_p4 = por %p2319_p3, %p2318_p2 }
  0x61   :  { %p2321_p5 = pnand %p2320_p4, %p2314_p1 }
  0x63   :  { %2324 = shalt.err (!%p2321_p5)
}
  0x64   :  { %109 = dma.hbm_to_vmem [thread:$0]  %s2823_s12, 2048, %s2525_s6, [#allocation12], %s2359_s25, %s2359_s25, %s2360_s26  }
  0x65   :  { %2347 = dma.done.wait [#allocation3], 1024  }
  0x66   :  { %2348 = vsyncadd [#allocation3], 4294966272 }
  0x67   :  { %2349 = dma.done.wait [#allocation6], 1920  }
  0x68   :  { %2350 = vsyncadd [#allocation6], 4294965376 }
  0x69   :  { %2351 = dma.done.wait [#allocation9], 3072  }
  0x6a   :  { %2352 = vsyncadd [#allocation9], 4294964224 }
  0x6b   :  { %2353 = dma.done.wait [#allocation12], 2048  }
  0x6c   :  { %2354 = vsyncadd [#allocation12], 4294965248  ;;  %v2565_v0 = vld [vmem:[%s2811_s0 + $0x10] sm:$0xff]  ;;  %v2570_v1 = vld [vmem:[%s2811_s0] sm:$0xff]  ;;  %s2365_s3 = smov 125   ;;  %vm138_vm0 = vcmask 23552  }
  0x6d   :  { %v2575_v2 = vld [vmem:[%s2811_s0 + $0x8] sm:$0xff]  ;;  %v136_v3 = vmul.f32 %v2565_v0, %v2565_v0  ;;  %v134_v4 = vmul.f32 %v2570_v1, %v2570_v1  ;;  %v2584_v5 = vld [vmem:[%s2811_s0 + $0x18] sm:$0xff]  ;;  %s2366_s0 = smov 1   ;;  %v265_v22 = vld [vmem:[#allocation2] sm:$0xff]  ;;  %vm273_vm1 = vcmask 261120   ;;  %vm255_vm10 = vcmask 31744  }
  0x6e   :  { %v135_v6 = vmul.f32 %v2575_v2, %v2575_v2  ;;  %v137_v7 = vmul.f32 %v2584_v5, %v2584_v5  ;;  %v2149_v20 = vpack.i.bf16 %v2575_v2, %v2570_v1  ;;  %v2154_v21 = vpack.i.bf16 %v2584_v5, %v2565_v0  ;;  %1787 = vmatprep.mubr.msk.f32.mxu0 %vm273_vm1, %v265_v22  ;;  %s2371_s28 = smov 48   ;;  %s2372_s15 = smov 32  }
  0x6f   :  { %187 = vrot.lane.b32.xlu1 %v136_v3, %s2365_s3  ;;  %183 = vrot.lane.b32.xlu0 %v134_v4, %s2365_s3  ;;  %v139_v8 = vsel %vm138_vm0, %v134_v4, 0.0  ;;  %v145_v11 = vsel %vm138_vm0, %v136_v3, 0.0  ;;  %vm260_vm11 = vcmask 56320   ;;  %s2373_s17 = smov 64   ;;  %s2375_s22 = smov [#allocation13]  }
  0x70   :  { %v148_v9 = vsel %vm138_vm0, %v137_v7, 0.0  ;;  %v142_v10 = vsel %vm138_vm0, %v135_v6, 0.0  ;;  %s1634_s8 = sshll.u32 %s2375_s22, 4  ;;  %s1635_s8 = int_to_ptr.vmem [resolvable:$true] %s1634_s8 }
  0x71   :  { %s2325_s20 = scalar_lea.vmem %s1635_s8, 32  ;;  %p2330_p7 = scmp.lt.s32.totalorder %s1635_s8, %s1635_s8 }
  0x72   :  { %p2326_p6 = scmp.ne.s32.totalorder %s1635_s8, %s2325_s20  ;;  %p2331_p8 = scmp.lt.s32.totalorder %s2325_s20, %s2325_s20 }
  0x73   :  { %185 = vrot.lane.b32.xlu0 %v135_v6, %s2365_s3  ;;  %189 = vrot.lane.b32.xlu1 %v137_v7, %s2365_s3 }
  0x74   :  { %p2332_p9 = por %p2331_p8, %p2330_p7 }
  0x76   :  { %p2333_p10 = pnand %p2332_p9, %p2326_p6 }
  0x92   :  { %140 = vadd.xlane.f32.xlu0 %v139_v8 }
  0x96   :  { %149 = vadd.xlane.f32.xlu0 %v148_v9 }
  0x97   :  { %143 = vadd.xlane.f32.xlu1 %v142_v10 }
  0x9b   :  { %146 = vadd.xlane.f32.xlu1 %v145_v11 }
  0xe1   :  { %v188_v12 = vpop.permute.xlu1 %187  ;;  %v184_v13 = vpop.permute.xlu0 %183 }
  0xe2   :  { %v201_v14 = vsel %vm138_vm0, %v188_v12, 0.0  ;;  %v195_v15 = vsel %vm138_vm0, %v184_v13, 0.0 }
  0xe3   :  { %202 = vadd.xlane.f32.xlu1 %v201_v14  ;;  %196 = vadd.xlane.f32.xlu0 %v195_v15 }
  0xe5   :  { %v186_v16 = vpop.permute.xlu0 %185  ;;  %v190_v17 = vpop.permute.xlu1 %189 }
  0xe6   :  { %v198_v18 = vsel %vm138_vm0, %v186_v16, 0.0  ;;  %v204_v19 = vsel %vm138_vm0, %v190_v17, 0.0 }
  0xe7   :  { %199 = vadd.xlane.f32.xlu0 %v198_v18 }
  0xeb   :  { %205 = vadd.xlane.f32.xlu0 %v204_v19 }
  0xf4   :  { %2150 = vrot.lane.b32.xlu1 %v2149_v20, %s2366_s0 }
 0x101   :  { %2155 = vrot.lane.b32.xlu0 %v2154_v21, %s2366_s0 }
 0x11f   :  { %v141_v24 = vpop.xlane.xlu0 %140 }
 0x120   :  { %2169 = vrsqrt.f32 %v141_v24  ;;  %vm153_vm2 = vcmp.eq.f32.partialorder %v141_v24, inf  ;;  %v156_v37 = vand.u32 2147483648, %v141_v24  ;;  %vm155_vm5 = vcmp.eq.f32.partialorder %v141_v24, 0.0 }
 0x123   :  { %v150_v26 = vpop.xlane.xlu0 %149 }
 0x124   :  { %v144_v23 = vpop.xlane.xlu1 %143  ;;  %vm174_vm6 = vcmp.eq.f32.partialorder %v150_v26, inf  ;;  %v177_v45 = vand.u32 2147483648, %v150_v26  ;;  %vm176_vm9 = vcmp.eq.f32.partialorder %v150_v26, 0.0 }
 0x125   :  { %2171 = vrsqrt.f32 %v144_v23  ;;  %vm160_vm3 = vcmp.eq.f32.partialorder %v144_v23, inf  ;;  %v163_v39 = vand.u32 2147483648, %v144_v23  ;;  %vm162_vm8 = vcmp.eq.f32.partialorder %v144_v23, 0.0 }
 0x128   :  { %v147_v25 = vpop.xlane.xlu1 %146 }
 0x129   :  { %2173 = vrsqrt.f32 %v147_v25  ;;  %vm167_vm4 = vcmp.eq.f32.partialorder %v147_v25, inf  ;;  %v170_v40 = vand.u32 2147483648, %v147_v25  ;;  %vm169_vm7 = vcmp.eq.f32.partialorder %v147_v25, 0.0 }
 0x12a   :  { %2175 = vrsqrt.f32 %v150_v26  ;;  %v2170_v27 = vpop.eup %2169 }
 0x12b   :  { %v152_v33 = vmul.f32 %v2170_v27, %v141_v24 }
 0x12d   :  { %v154_v41 = vsel %vm153_vm2, %v141_v24, %v152_v33  ;;  %v272_v33 = vld [vmem:[#allocation2 + $0x38] sm:$0xff] }
 0x12e   :  { %v157_v47 = vsel %vm155_vm5, %v156_v37, %v154_v41 }
 0x12f   :  { %v2172_v28 = vpop.eup %2171  ;;  %v251_v55 = vsel %vm138_vm0, %v2570_v1, %v157_v47 }
 0x130   :  { %v159_v34 = vmul.f32 %v2172_v28, %v144_v23  ;;  %v266_v28 = vld [vmem:[#allocation2 + $0x8] sm:$0xff] }
 0x132   :  { %v161_v44 = vsel %vm160_vm3, %v144_v23, %v159_v34 }
 0x133   :  { %v2174_v31 = vpop.eup %2173  ;;  %v164_v50 = vsel %vm162_vm8, %v163_v39, %v161_v44 }
 0x134   :  { %v2176_v32 = vpop.eup %2175  ;;  %v166_v35 = vmul.f32 %v2174_v31, %v147_v25  ;;  %v252_v59 = vsel %vm138_vm0, %v2575_v2, %v164_v50  ;;  %v270_v31 = vld [vmem:[#allocation2 + $0x28] sm:$0xff] }
 0x135   :  { %v173_v38 = vmul.f32 %v2176_v32, %v150_v26  ;;  %v271_v32 = vld [vmem:[#allocation2 + $0x30] sm:$0xff] }
 0x136   :  { %v168_v42 = vsel %vm167_vm4, %v147_v25, %v166_v35 }
 0x137   :  { %v175_v46 = vsel %vm174_vm6, %v150_v26, %v173_v38  ;;  %v171_v49 = vsel %vm169_vm7, %v170_v40, %v168_v42 }
 0x138   :  { %v178_v53 = vsel %vm176_vm9, %v177_v45, %v175_v46  ;;  %v253_v57 = vsel %vm138_vm0, %v2565_v0, %v171_v49  ;;  %vm2368_vm9 = vmmov 0  }
 0x139   :  { %v254_v21 = vsel %vm138_vm0, %v2584_v5, %v178_v53  ;;  %v267_v5 = vld [vmem:[#allocation2 + $0x10] sm:$0xff] }
 0x170   :  { %v2603_v29 = vpop.xlane.xlu1 %202  ;;  %v197_v30 = vpop.xlane.xlu0 %196 }
 0x171   :  { %2177 = vrsqrt.f32 %v2603_v29  ;;  %vm209_vm12 = vcmp.eq.f32.partialorder %v197_v30, inf  ;;  %v212_v3 = vand.u32 2147483648, %v197_v30  ;;  %vm211_vm13 = vcmp.eq.f32.partialorder %v197_v30, 0.0 }
 0x172   :  { %2179 = vrsqrt.f32 %v197_v30  ;;  %vm223_vm14 = vcmp.eq.f32.partialorder %v2603_v29, inf  ;;  %vm225_vm15 = vcmp.eq.f32.partialorder %v2603_v29, 0.0  ;;  %v226_v2 = vand.u32 2147483648, %v2603_v29 }
 0x174   :  { %v200_v36 = vpop.xlane.xlu0 %199  ;;  %v2151_v52 = vpop.permute.xlu1 %2150 }
 0x175   :  { %2181 = vrsqrt.f32 %v200_v36  ;;  %v2153_v61 = vunpack.i.h.bf16 %v2151_v52  ;;  %v2152_v62 = vunpack.i.l.bf16 %v2151_v52  ;;  %vm216_vm2 = vcmp.eq.f32.partialorder %v200_v36, inf }
 0x176   :  { %v219_v0 = vand.u32 2147483648, %v200_v36  ;;  %vm218_vm3 = vcmp.eq.f32.partialorder %v200_v36, 0.0 }
 0x177   :  { %v256_v12 = vsel %vm255_vm10, %v251_v55, %v2152_v62  ;;  %v257_v13 = vsel %vm255_vm10, %v252_v59, %v2153_v61 }
 0x178   :  { %v206_v43 = vpop.xlane.xlu0 %205 }
 0x179   :  { %2183 = vrsqrt.f32 %v206_v43  ;;  %vm230_vm4 = vcmp.eq.f32.partialorder %v206_v43, inf  ;;  %v233_v20 = vand.u32 2147483648, %v206_v43  ;;  %vm232_vm5 = vcmp.eq.f32.partialorder %v206_v43, 0.0 }
 0x17b   :  { %v2178_v48 = vpop.eup %2177 }
 0x17c   :  { %v2180_v51 = vpop.eup %2179  ;;  %v222_v56 = vmul.f32 %v2178_v48, %v2603_v29  ;;  %v2156_v58 = vpop.permute.xlu0 %2155 }
 0x17d   :  { %v208_v54 = vmul.f32 %v2180_v51, %v197_v30  ;;  %v2157_v1 = vunpack.i.l.bf16 %v2156_v58  ;;  %v2158_v10 = vunpack.i.h.bf16 %v2156_v58 }
 0x17e   :  { %v224_v8 = vsel %vm223_vm14, %v2603_v29, %v222_v56  ;;  %v268_v29 = vld [vmem:[#allocation2 + $0x18] sm:$0xff]  ;;  %vm459_vm14 = vcmask 64512  }
 0x17f   :  { %v2182_v60 = vpop.eup %2181  ;;  %v210_v63 = vsel %vm209_vm12, %v197_v30, %v208_v54  ;;  %v258_v17 = vsel %vm255_vm10, %v253_v57, %v2157_v1  ;;  %v227_v19 = vsel %vm225_vm15, %v226_v2, %v224_v8  ;;  %v259_v23 = vsel %vm255_vm10, %v254_v21, %v2158_v10  ;;  %v269_v30 = vld [vmem:[#allocation2 + $0x20] sm:$0xff] }
 0x180   :  { %v215_v4 = vmul.f32 %v2182_v60, %v200_v36  ;;  %v213_v6 = vsel %vm211_vm13, %v212_v3, %v210_v63  ;;  %v2634_v25 = vsel %vm260_vm11, %v258_v17, %v227_v19  ;;  %v2367_v57 = vmov 0.0|0.0  }
 0x181   :  { %v2620_v15 = vsel %vm260_vm11, %v256_v12, %v213_v6  ;;  %2031 = vmatprep.subr.bf16.mxu1 %v2367_v57  ;;  %vm850_vm15 = vcmask 130048  }
 0x182   :  { %v217_v7 = vsel %vm216_vm2, %v200_v36, %v215_v4  ;;  %vm853_vm2 = vcmask 392192  }
 0x183   :  { %v2184_v9 = vpop.eup %2183  ;;  %v220_v11 = vsel %vm218_vm3, %v219_v0, %v217_v7  ;;  %v2369_v0 = vmov 0.0   ;;  %vm855_vm3 = vcmask 523264  }
 0x184   :  { %v229_v14 = vmul.f32 %v2184_v9, %v206_v43  ;;  %v2623_v16 = vsel %vm260_vm11, %v257_v13, %v220_v11  ;;  %1840 = vmatprep.mubr.msk.f32.mxu1 %vm2368_vm9, %v2369_v0 }
 0x185   :  { %v2005_v18 = vpack.c.bf16 %v2623_v16, %v2620_v15 }
 0x186   :  { %v231_v22 = vsel %vm230_vm4, %v206_v43, %v229_v14  ;;  %vm874_vm4 = vcmask 654336  }
 0x187   :  { %2006 = vmatprep.subr.bf16.mxu0 %v2005_v18  ;;  %v234_v24 = vsel %vm232_vm5, %v233_v20, %v231_v22  ;;  %vm1259_vm5 = vcmask 785408  }
 0x188   :  { %2008 = vmatpush3.bf16.msra.mxu0 %v2005_v18  ;;  %v2637_v26 = vsel %vm260_vm11, %v259_v23, %v234_v24 }
 0x189   :  { %v2009_v27 = vpack.c.bf16 %v2637_v26, %v2634_v25 }
 0x18b   :  { %2010 = vmatprep.subr.bf16.mxu0 %v2009_v27 }
 0x18c   :  { %2012 = vmatpush3.bf16.msra.mxu0 %v2009_v27 }
 0x18d   :  { %2013 = vmatprep.subr.bf16.mxu0 %v2367_v57 }
 0x18f   :  { %1788 = vmatmul.mubr.msk.f32.vlgmr.msra.gmra.mrb[0].mxu0 %vm273_vm1, %v266_v28 }
 0x190   :  { %1790 = vmatprep.mubr.msk.f32.mxu0 %vm273_vm1, %v267_v5 }
 0x193   :  { %1791 = vmatmul.mubr.msk.f32.gmra.mrb[2].mxu0 %vm273_vm1, %v268_v29  ;;  %v686_v29 = vld [vmem:[#allocation5 + $0x18] sm:$0xff] }
 0x194   :  { %1793 = vmatprep.mubr.msk.f32.mxu0 %vm273_vm1, %v269_v30  ;;  %v760_v30 = vld [vmem:[#allocation5 + $0x20] sm:$0xff] }
 0x197   :  { %1794 = vmatmul.mubr.msk.f32.gmra.mrb[4].mxu0 %vm273_vm1, %v270_v31  ;;  %v857_v31 = vld [vmem:[#allocation7] sm:$0xff] }
 0x198   :  { %1796 = vmatprep.mubr.msk.f32.mxu0 %vm273_vm1, %v271_v32  ;;  %v858_v32 = vld [vmem:[#allocation7 + $0x8] sm:$0xff] }
 0x19b   :  { %1797 = vmatmul.mubr.msk.f32.gmra.mrb[6].mxu0 %vm273_vm1, %v272_v33  ;;  %v2044_v33 = vpack.c.bf16 %v858_v32, %v857_v31  ;;  %v1275_v32 = vld [vmem:[#allocation8 + $0x70] sm:$0xff] }
 0x19c   :  { %1807 = vmatprep.mubr.msk.f32.mxu0 %vm2368_vm9, %v2369_v0 }
 0x262   :  { %v1789_v34 = vpop.f32.mrb[0].mxu0 }
 0x263   :  { %v364_v35 = vpop.f32.mrb[1].mxu0  ;;  %v404_v39 = vmul.f32 %v1789_v34, %v1789_v34  ;;  %v859_v34 = vld [vmem:[#allocation7 + $0x10] sm:$0xff] }
 0x264   :  { %v403_v42 = vmul.f32 %v364_v35, %v364_v35  ;;  %v860_v35 = vld [vmem:[#allocation7 + $0x18] sm:$0xff] }
 0x266   :  { %v1792_v36 = vpop.f32.mrb[2].mxu0 }
 0x267   :  { %v374_v37 = vpop.f32.mrb[3].mxu0  ;;  %v406_v47 = vmul.f32 %v1792_v36, %v1792_v36  ;;  %v861_v36 = vld [vmem:[#allocation7 + $0x20] sm:$0xff] }
 0x268   :  { %v405_v50 = vmul.f32 %v374_v37, %v374_v37  ;;  %v2047_v37 = vpack.c.bf16 %v860_v35, %v859_v34 }
 0x26a   :  { %v1795_v38 = vpop.f32.mrb[4].mxu0 }
 0x26b   :  { %v408_v40 = vmul.f32 %v1795_v38, %v1795_v38  ;;  %v384_v41 = vpop.f32.mrb[5].mxu0  ;;  %v862_v38 = vld [vmem:[#allocation7 + $0x28] sm:$0xff] }
 0x26c   :  { %v407_v43 = vmul.f32 %v384_v41, %v384_v41 }
 0x26d   :  { %v412_v44 = vadd.f32 %v408_v40, %v404_v39  ;;  %v2050_v39 = vpack.c.bf16 %v862_v38, %v861_v36  ;;  %v1356_v38 = vld [vmem:[#allocation10 + $0x8] sm:$0xff] }
 0x26e   :  { %v411_v45 = vadd.f32 %v407_v43, %v403_v42  ;;  %v1798_v46 = vpop.f32.mrb[6].mxu0 }
 0x26f   :  { %v410_v48 = vmul.f32 %v1798_v46, %v1798_v46  ;;  %v394_v49 = vpop.f32.mrb[7].mxu0  ;;  %2185 = vrsqrt.f32 %v412_v44  ;;  %vm424_vm0 = vcmp.eq.f32.partialorder %v412_v44, inf  ;;  %vm426_vm6 = vcmp.eq.f32.partialorder %v412_v44, 0.0  ;;  %v865_v46 = vld [vmem:[#allocation7 + $0x40] sm:$0xff] }
 0x270   :  { %v409_v51 = vmul.f32 %v394_v49, %v394_v49  ;;  %2187 = vrsqrt.f32 %v411_v45  ;;  %v427_v59 = vand.u32 2147483648, %v412_v44  ;;  %vm417_vm7 = vcmp.eq.f32.partialorder %v411_v45, inf }
 0x271   :  { %v414_v52 = vadd.f32 %v410_v48, %v406_v47  ;;  %vm419_vm8 = vcmp.eq.f32.partialorder %v411_v45, 0.0  ;;  %v420_v60 = vand.u32 2147483648, %v411_v45  ;;  %v866_v48 = vld [vmem:[#allocation7 + $0x48] sm:$0xff] }
 0x272   :  { %v413_v53 = vadd.f32 %v409_v51, %v405_v50  ;;  %v2056_v50 = vpack.c.bf16 %v866_v48, %v865_v46  ;;  %v1360_v46 = vld [vmem:[#allocation10 + $0x28] sm:$0xff] }
 0x273   :  { %2189 = vrsqrt.f32 %v414_v52  ;;  %vm438_vm10 = vcmp.eq.f32.partialorder %v414_v52, inf  ;;  %v441_v2 = vand.u32 2147483648, %v414_v52  ;;  %vm440_vm12 = vcmp.eq.f32.partialorder %v414_v52, 0.0 }
 0x274   :  { %2191 = vrsqrt.f32 %v413_v53  ;;  %vm431_vm11 = vcmp.eq.f32.partialorder %v413_v53, inf  ;;  %v434_v9 = vand.u32 2147483648, %v413_v53  ;;  %vm433_vm13 = vcmp.eq.f32.partialorder %v413_v53, 0.0 }
 0x279   :  { %v2186_v54 = vpop.eup %2185 }
 0x27a   :  { %v2188_v55 = vpop.eup %2187  ;;  %v423_v56 = vmul.f32 %v2186_v54, %v412_v44 }
 0x27b   :  { %v416_v58 = vmul.f32 %v2188_v55, %v411_v45 }
 0x27c   :  { %v425_v61 = vsel %vm424_vm0, %v412_v44, %v423_v56  ;;  %v863_v44 = vld [vmem:[#allocation7 + $0x30] sm:$0xff] }
 0x27d   :  { %v2190_v62 = vpop.eup %2189  ;;  %v418_v63 = vsel %vm417_vm7, %v411_v45, %v416_v58  ;;  %v428_v3 = vsel %vm426_vm6, %v427_v59, %v425_v61  ;;  %v864_v45 = vld [vmem:[#allocation7 + $0x38] sm:$0xff] }
 0x27e   :  { %v2192_v4 = vpop.eup %2191  ;;  %v421_v1 = vsel %vm419_vm8, %v420_v60, %v418_v63  ;;  %v437_v6 = vmul.f32 %v2190_v62, %v414_v52  ;;  %v2053_v47 = vpack.c.bf16 %v864_v45, %v863_v44  ;;  %v1359_v45 = vld [vmem:[#allocation10 + $0x20] sm:$0xff] }
 0x27f   :  { %v2159_v7 = vpack.i.bf16 %v428_v3, %v421_v1  ;;  %v430_v8 = vmul.f32 %v2192_v4, %v413_v53  ;;  %v1659_v4 = vld [vmem:[%s2815_s4] ss:$0 sm:$0xff]  ;;  %v2089_v48 = vpack.c.bf16 %v1360_v46, %v1359_v45 }
 0x280   :  { %v439_v10 = vsel %vm438_vm10, %v414_v52, %v437_v6 }
 0x281   :  { %2160 = vrot.lane.b32.xlu1 %v2159_v7, %s2360_s26  ;;  %v432_v11 = vsel %vm431_vm11, %v413_v53, %v430_v8  ;;  %v442_v12 = vsel %vm440_vm12, %v441_v2, %v439_v10  ;;  %v949_v2 = vld [vmem:[%s2816_s5] sm:$0x3]  ;;  %v1097_v10 = vld [vmem:[%s2816_s5 + $0x4] sm:$0x3] }
 0x282   :  { %v435_v13 = vsel %vm433_vm13, %v434_v9, %v432_v11  ;;  %v1023_v9 = vld [vmem:[%s2816_s5 + $0x2] sm:$0x3]  ;;  %v1171_v11 = vld [vmem:[%s2816_s5 + $0x6] sm:$0x3]  ;;  %s2374_s5 = smov 96  }
 0x283   :  { %v2164_v14 = vpack.i.bf16 %v442_v12, %v435_v13  ;;  %v1261_v12 = vld [vmem:[#allocation8] sm:$0xff]  ;;  %v1262_v13 = vld [vmem:[#allocation8 + $0x8] sm:$0xff] }
 0x285   :  { %2165 = vrot.lane.b32.xlu1 %v2164_v14, %s2360_s26  ;;  %s2370_s26 = smov 16   ;;  %v1263_v14 = vld [vmem:[#allocation8 + $0x10] sm:$0xff] }
 0x2f3   :  { %v2161_v17 = vpop.permute.xlu1 %2160 }
 0x2f4   :  { %v2163_v18 = vunpack.i.h.bf16 %v2161_v17  ;;  %v2162_v19 = vunpack.i.l.bf16 %v2161_v17  ;;  %v2059_v17 = vpack.c.bf16 %v1262_v13, %v1261_v12  ;;  %v1449_v12 = vld [vmem:[%s2821_s10 + $0x28] sm:$0xff] }
 0x2f6   :  { %v461_v20 = vsel %vm459_vm14, %v2623_v16, %v2163_v18  ;;  %v460_v21 = vsel %vm459_vm14, %v2620_v15, %v2162_v19  ;;  %v464_v15 = vld [vmem:[#allocation5] sm:$0xff]  ;;  %v1264_v18 = vld [vmem:[#allocation8 + $0x18] sm:$0xff] }
 0x2f7   :  { %v2014_v22 = vpack.c.bf16 %v461_v20, %v460_v21  ;;  %v2166_v23 = vpop.permute.xlu1 %2165  ;;  %v2062_v19 = vpack.c.bf16 %v1264_v18, %v1263_v14  ;;  %v1265_v20 = vld [vmem:[#allocation8 + $0x20] sm:$0xff]  ;;  %v1266_v21 = vld [vmem:[#allocation8 + $0x28] sm:$0xff] }
 0x2f8   :  { %v2168_v24 = vunpack.i.h.bf16 %v2166_v23  ;;  %v2167_v27 = vunpack.i.l.bf16 %v2166_v23  ;;  %v1267_v23 = vld [vmem:[#allocation8 + $0x30] sm:$0xff]  ;;  %v1451_v14 = vld [vmem:[%s2821_s10 + $0x38] sm:$0xff] }
 0x2f9   :  { %2015 = vmatpush3.bf16.msra.mxu0 %v2014_v22  ;;  %2033 = vmatpush3.bf16.msra.mxu1 %v2014_v22  ;;  %v1533_v18 = vld [vmem:[#allocation11] sm:$0xff] }
 0x2fa   :  { %v463_v28 = vsel %vm459_vm14, %v2637_v26, %v2168_v24  ;;  %v462_v5 = vsel %vm459_vm14, %v2634_v25, %v2167_v27  ;;  %2016 = vmatprep.subr.bf16.mxu0 %v2367_v57  ;;  %2034 = vmatprep.subr.bf16.mxu1 %v2367_v57  ;;  %v538_v25 = vld [vmem:[#allocation5 + $0x8] sm:$0xff]  ;;  %v612_v26 = vld [vmem:[#allocation5 + $0x10] sm:$0xff] }
 0x2fb   :  { %v2017_v16 = vpack.c.bf16 %v463_v28, %v462_v5  ;;  %v1268_v24 = vld [vmem:[#allocation8 + $0x38] sm:$0xff]  ;;  %v1269_v28 = vld [vmem:[#allocation8 + $0x40] sm:$0xff]  ;;  %v1270_v5 = vld [vmem:[#allocation8 + $0x48] sm:$0xff] }
 0x2fc   :  { %v2068_v27 = vpack.c.bf16 %v1268_v24, %v1267_v23  ;;  %v1537_v24 = vld [vmem:[#allocation11 + $0x20] sm:$0xff] }
 0x2fd   :  { %2018 = vmatpush3.bf16.msra.mxu0 %v2017_v16  ;;  %2036 = vmatpush3.bf16.msra.mxu1 %v2017_v16 }
 0x2fe   :  { %2019 = vmatprep.subr.bf16.mxu0 %v2367_v57  ;;  %2043 = vmatprep.subr.bf16.mxu1 %v2367_v57 }
 0x300   :  { %1808 = vmatmul.mubr.msk.f32.vlgmr.msra.gmra.mrb[8].mxu0 %vm273_vm1, %v464_v15  ;;  %1841 = vmatmul.mubr.msk.f32.vlgmr.msra.gmra.mrb[0].mxu1 %vm273_vm1, %v686_v29  ;;  %v1271_v15 = vld [vmem:[#allocation8 + $0x50] sm:$0xff]  ;;  %v1272_v29 = vld [vmem:[#allocation8 + $0x58] sm:$0xff] }
 0x301   :  { %2021 = vmatpush3.bf16.msra.mxu0 %v2014_v22  ;;  %1818 = vmatprep.mubr.msk.f32.mxu0 %vm2368_vm9, %v2369_v0 }
 0x302   :  { %2022 = vmatprep.subr.bf16.mxu0 %v2367_v57  ;;  %1874 = vmatprep.mubr.msk.f32.mxu1 %vm2368_vm9, %v2369_v0 }
 0x303   :  { %2045 = vmatpush3.bf16.msra.mxu1 %v2044_v33  ;;  %v1276_v33 = vld [vmem:[#allocation8 + $0x78] sm:$0xff] }
 0x304   :  { %2046 = vmatprep.subr.bf16.mxu1 %v2367_v57  ;;  %v2080_v34 = vpack.c.bf16 %v1276_v33, %v1275_v32  ;;  %v1545_v33 = vld [vmem:[#allocation11 + $0x60] sm:$0xff] }
 0x305   :  { %2024 = vmatpush3.bf16.msra.mxu0 %v2017_v16 }
 0x306   :  { %2025 = vmatprep.subr.bf16.mxu0 %v2367_v57 }
 0x307   :  { %2048 = vmatpush3.bf16.msra.mxu1 %v2047_v37  ;;  %v1355_v37 = vld [vmem:[#allocation10] sm:$0xff] }
 0x308   :  { %1819 = vmatmul.mubr.msk.f32.vlgmr.msra.gmra.mrb[10].mxu0 %vm273_vm1, %v538_v25  ;;  %2049 = vmatprep.subr.bf16.mxu1 %v2367_v57  ;;  %v2074_v25 = vpack.c.bf16 %v1272_v29, %v1271_v15  ;;  %v1541_v29 = vld [vmem:[#allocation11 + $0x40] sm:$0xff] }
 0x309   :  { %2027 = vmatpush3.bf16.msra.mxu0 %v2014_v22  ;;  %1829 = vmatprep.mubr.msk.f32.mxu0 %vm2368_vm9, %v2369_v0 }
 0x30a   :  { %2028 = vmatprep.subr.bf16.mxu0 %v2367_v57 }
 0x30b   :  { %2051 = vmatpush3.bf16.msra.mxu1 %v2050_v39  ;;  %v1357_v39 = vld [vmem:[#allocation10 + $0x10] sm:$0xff] }
 0x30c   :  { %2052 = vmatprep.subr.bf16.mxu1 %v2367_v57 }
 0x30d   :  { %2030 = vmatpush3.bf16.msra.mxu0 %v2017_v16 }
 0x30e   :  { %2037 = vmatprep.subr.bf16.mxu0 %v2367_v57 }
 0x30f   :  { %2054 = vmatpush3.bf16.msra.mxu1 %v2053_v47 }
 0x310   :  { %1830 = vmatmul.mubr.msk.f32.vlgmr.msra.gmra.mrb[12].mxu0 %vm273_vm1, %v612_v26  ;;  %2055 = vmatprep.subr.bf16.mxu1 %v2367_v57  ;;  %v1273_v26 = vld [vmem:[#allocation8 + $0x60] sm:$0xff] }
 0x311   :  { %2039 = vmatpush3.bf16.msra.mxu0 %v2014_v22  ;;  %1851 = vmatprep.mubr.msk.f32.mxu0 %vm2368_vm9, %v2369_v0  ;;  %v2065_v22 = vpack.c.bf16 %v1266_v21, %v1265_v20  ;;  %v1535_v20 = vld [vmem:[#allocation11 + $0x10] sm:$0xff] }
 0x312   :  { %2040 = vmatprep.subr.bf16.mxu0 %v2367_v57 }
 0x313   :  { %2057 = vmatpush3.bf16.msra.mxu1 %v2056_v50 }
 0x314   :  { %2058 = vmatprep.subr.bf16.mxu1 %v2367_v57 }
 0x315   :  { %2042 = vmatpush3.bf16.msra.mxu0 %v2017_v16  ;;  %v2071_v16 = vpack.c.bf16 %v1270_v5, %v1269_v28  ;;  %v1539_v5 = vld [vmem:[#allocation11 + $0x30] sm:$0xff] }
 0x316   :  { %1877 = vmatprep.subr.mxu0 %v2369_v0 }
 0x318   :  { %1852 = vmatmul.mubr.msk.f32.vlgmr.msra.gmra.mrb[14].mxu0 %vm273_vm1, %v760_v30  ;;  %v1274_v30 = vld [vmem:[#allocation8 + $0x68] sm:$0xff] }
 0x319   :  { %1879 = vmatprep.mubr.msk.f32.mxu0 %vm2368_vm9, %v2369_v0  ;;  %v2077_v31 = vpack.c.bf16 %v1274_v30, %v1273_v26  ;;  %v1543_v30 = vld [vmem:[#allocation11 + $0x50] sm:$0xff] }
 0x3d3   :  { %v534_v40 = vpop.f32.mrb[8].mxu0  ;;  %v756_v41 = vpop.f32.mrb[0].mxu1 }
 0x3d4   :  { %v1809_v42 = vpop.f32.mrb[9].mxu0  ;;  %v1842_v43 = vpop.f32.mrb[1].mxu1 }
 0x3db   :  { %v608_v49 = vpop.f32.mrb[10].mxu0 }
 0x3dc   :  { %835 = vrot.lane.b32.xlu0 %v608_v49, %s2370_s26  ;;  %v1820_v51 = vpop.f32.mrb[11].mxu0 }
 0x3e0   :  { %843 = vrot.lane.b32.xlu0 %v756_v41, %s2371_s28  ;;  %v1358_v41 = vld [vmem:[#allocation10 + $0x18] sm:$0xff] }
 0x3e1   :  { %v2086_v43 = vpack.c.bf16 %v1358_v41, %v1357_v39  ;;  %v1547_v41 = vld [vmem:[#allocation11 + $0x70] sm:$0xff] }
 0x3e3   :  { %v682_v52 = vpop.f32.mrb[12].mxu0 }
 0x3e4   :  { %839 = vrot.lane.b32.xlu1 %v682_v52, %s2372_s15  ;;  %v1831_v53 = vpop.f32.mrb[13].mxu0 }
 0x3eb   :  { %v830_v54 = vpop.f32.mrb[14].mxu0 }
 0x3ec   :  { %847 = vrot.lane.b32.xlu1 %v830_v54, %s2373_s17  ;;  %v1853_v55 = vpop.f32.mrb[15].mxu0 }
 0x44e   :  { %v836_v56 = vpop.permute.xlu0 %835 }
 0x44f   :  { %v851_v59 = vsel %vm850_vm15, %v534_v40, %v836_v56  ;;  %v2083_v40 = vpack.c.bf16 %v1356_v38, %v1355_v37 }
 0x452   :  { %v844_v61 = vpop.permute.xlu0 %843 }
 0x456   :  { %v840_v58 = vpop.permute.xlu1 %839 }
 0x457   :  { %v852_v60 = vsel %vm273_vm1, %v851_v59, %v840_v58  ;;  %v1361_v59 = vld [vmem:[#allocation10 + $0x30] sm:$0xff] }
 0x458   :  { %v854_v62 = vsel %vm853_vm2, %v852_v60, %v844_v61  ;;  %v1362_v60 = vld [vmem:[#allocation10 + $0x38] sm:$0xff] }
 0x459   :  { %v2092_v61 = vpack.c.bf16 %v1362_v60, %v1361_v59 }
 0x45e   :  { %v848_v63 = vpop.permute.xlu1 %847 }
 0x45f   :  { %v856_v3 = vsel %vm855_vm3, %v854_v62, %v848_v63  ;;  %v1665_v62 = vld [vmem:[%s2818_s7] ss:$0 sm:$0xff] }
 0x460   :  { %1875 = vmatmul.mubr.msk.f32.vlgmr.msra.gmra.mrb[2].mxu1 %vm874_vm4, %v856_v3  ;;  %v1444_v63 = vld [vmem:[%s2821_s10] sm:$0xff]  ;;  %v1445_v3 = vld [vmem:[%s2821_s10 + $0x8] sm:$0xff] }
 0x461   :  { %1929 = vmatprep.mubr.msk.f32.mxu1 %vm2368_vm9, %v2369_v0  ;;  %2060 = vmatpush3.bf16.msra.mxu1 %v2059_v17 }
 0x462   :  { %2061 = vmatprep.subr.bf16.mxu1 %v2367_v57 }
 0x465   :  { %2063 = vmatpush3.bf16.msra.mxu1 %v2062_v19  ;;  %v1534_v19 = vld [vmem:[#allocation11 + $0x8] sm:$0xff] }
 0x466   :  { %2064 = vmatprep.subr.bf16.mxu1 %v2367_v57  ;;  %v2107_v21 = vpack.c.bf16 %v1534_v19, %v1533_v18 }
 0x469   :  { %2066 = vmatpush3.bf16.msra.mxu1 %v2065_v22  ;;  %v1536_v22 = vld [vmem:[#allocation11 + $0x18] sm:$0xff] }
 0x46a   :  { %2067 = vmatprep.subr.bf16.mxu1 %v2367_v57  ;;  %v2110_v23 = vpack.c.bf16 %v1536_v22, %v1535_v20 }
 0x46d   :  { %2069 = vmatpush3.bf16.msra.mxu1 %v2068_v27  ;;  %v1538_v27 = vld [vmem:[#allocation11 + $0x28] sm:$0xff] }
 0x46e   :  { %2070 = vmatprep.subr.bf16.mxu1 %v2367_v57  ;;  %v2113_v28 = vpack.c.bf16 %v1538_v27, %v1537_v24 }
 0x471   :  { %2072 = vmatpush3.bf16.msra.mxu1 %v2071_v16  ;;  %v1540_v16 = vld [vmem:[#allocation11 + $0x38] sm:$0xff] }
 0x472   :  { %2073 = vmatprep.subr.bf16.mxu1 %v2367_v57  ;;  %v2116_v15 = vpack.c.bf16 %v1540_v16, %v1539_v5 }
 0x475   :  { %2075 = vmatpush3.bf16.msra.mxu1 %v2074_v25  ;;  %v1542_v25 = vld [vmem:[#allocation11 + $0x48] sm:$0xff] }
 0x476   :  { %2076 = vmatprep.subr.bf16.mxu1 %v2367_v57  ;;  %v2119_v26 = vpack.c.bf16 %v1542_v25, %v1541_v29 }
 0x479   :  { %2078 = vmatpush3.bf16.msra.mxu1 %v2077_v31  ;;  %v1544_v31 = vld [vmem:[#allocation11 + $0x58] sm:$0xff] }
 0x47a   :  { %2079 = vmatprep.subr.bf16.mxu1 %v2367_v57  ;;  %v2122_v32 = vpack.c.bf16 %v1544_v31, %v1543_v30 }
 0x47d   :  { %2081 = vmatpush3.bf16.msra.mxu1 %v2080_v34  ;;  %v1546_v34 = vld [vmem:[#allocation11 + $0x68] sm:$0xff] }
 0x47e   :  { %2106 = vmatprep.subr.bf16.mxu1 %v2367_v57 }
 0x533   :  { %v944_v1 = vpop.f32.mrb[2].mxu1 }
 0x534   :  { %v945_v6 = vadd.f32 %v1659_v4, %v944_v1  ;;  %v1876_v7 = vpop.f32.mrb[3].mxu1 }
 0x535   :  { %v2095_v7 = vpack.c.bf16 %v1445_v3, %v1444_v63 }
 0x536   :  { %v948_v8 = vmax.f32 %v945_v6, 0.0 }
 0x538   :  { %1878 = vmatpush3.msra.mxu0 %v948_v8 }
 0x539   :  { %1880 = vmatmul.mubr.msk.f32.vlgmr.msra.gmra.mrb[16].mxu0 %vm459_vm14, %v949_v2  ;;  %1882 = vmatprep.subr.mxu0 %v2369_v0  ;;  %v1446_v2 = vld [vmem:[%s2821_s10 + $0x10] sm:$0xff] }
 0x53a   :  { %1883 = vmatpush3.msra.mxu0 %v948_v8  ;;  %1884 = vmatprep.mubr.msk.f32.mxu0 %vm2368_vm9, %v2369_v0 }
 0x53b   :  { %1887 = vmatprep.subr.mxu0 %v2369_v0 }
 0x53d   :  { %1885 = vmatmul.mubr.msk.f32.vlgmr.msra.gmra.mrb[18].mxu0 %vm459_vm14, %v1023_v9  ;;  %v1447_v9 = vld [vmem:[%s2821_s10 + $0x18] sm:$0xff] }
 0x53e   :  { %1888 = vmatpush3.msra.mxu0 %v948_v8  ;;  %1889 = vmatprep.mubr.msk.f32.mxu0 %vm2368_vm9, %v2369_v0 }
 0x53f   :  { %1892 = vmatprep.subr.mxu0 %v2369_v0 }
 0x541   :  { %1890 = vmatmul.mubr.msk.f32.vlgmr.msra.gmra.mrb[20].mxu0 %vm459_vm14, %v1097_v10  ;;  %v2098_v10 = vpack.c.bf16 %v1447_v9, %v1446_v2 }
 0x542   :  { %1893 = vmatpush3.msra.mxu0 %v948_v8  ;;  %1894 = vmatprep.mubr.msk.f32.mxu0 %vm2368_vm9, %v2369_v0 }
 0x543   :  { %2082 = vmatprep.subr.bf16.mxu0 %v2367_v57 }
 0x545   :  { %1895 = vmatmul.mubr.msk.f32.vlgmr.msra.gmra.mrb[22].mxu0 %vm459_vm14, %v1171_v11  ;;  %v1448_v11 = vld [vmem:[%s2821_s10 + $0x20] sm:$0xff] }
 0x546   :  { %1948 = vmatprep.mubr.msk.f32.mxu0 %vm2368_vm9, %v2369_v0  ;;  %2084 = vmatpush3.bf16.msra.mxu0 %v2083_v40  ;;  %v2101_v13 = vpack.c.bf16 %v1449_v12, %v1448_v11 }
 0x547   :  { %2085 = vmatprep.subr.bf16.mxu0 %v2367_v57 }
 0x54a   :  { %2087 = vmatpush3.bf16.msra.mxu0 %v2086_v43 }
 0x54b   :  { %2088 = vmatprep.subr.bf16.mxu0 %v2367_v57 }
 0x54e   :  { %2090 = vmatpush3.bf16.msra.mxu0 %v2089_v48  ;;  %v1670_v48 = vld [vmem:[%s2824_s13] ss:$0 sm:$0xff] }
 0x54f   :  { %2091 = vmatprep.subr.bf16.mxu0 %v2367_v57 }
 0x552   :  { %2093 = vmatpush3.bf16.msra.mxu0 %v2092_v61 }
 0x553   :  { %2094 = vmatprep.subr.bf16.mxu0 %v2367_v57 }
 0x60c   :  { %v1019_v35 = vpop.f32.mrb[16].mxu0 }
 0x60d   :  { %v1881_v36 = vpop.f32.mrb[17].mxu0 }
 0x60e   :  { %v1666_v36 = vld [vmem:[%s2820_s9] ss:$0 sm:$0xff] }
 0x610   :  { %v1093_v42 = vpop.f32.mrb[18].mxu0 }
 0x611   :  { %1246 = vrot.lane.b32.xlu0 %v1093_v42, %s2372_s15  ;;  %v1886_v44 = vpop.f32.mrb[19].mxu0  ;;  %v1548_v42 = vld [vmem:[#allocation11 + $0x78] sm:$0xff] }
 0x612   :  { %v2128_v43 = vpack.c.bf16 %v1548_v42, %v1547_v41  ;;  %v1668_v44 = vld [vmem:[%s2822_s11] ss:$0 sm:$0xff] }
 0x614   :  { %v1167_v47 = vpop.f32.mrb[20].mxu0 }
 0x615   :  { %1250 = vrot.lane.b32.xlu1 %v1167_v47, %s2373_s17  ;;  %v1891_v49 = vpop.f32.mrb[21].mxu0 }
 0x618   :  { %v1241_v50 = vpop.f32.mrb[22].mxu0 }
 0x619   :  { %1254 = vrot.lane.b32.xlu0 %v1241_v50, %s2374_s5  ;;  %v1896_v51 = vpop.f32.mrb[23].mxu0 }
 0x683   :  { %v1247_v52 = vpop.permute.xlu0 %1246 }
 0x684   :  { %v1257_v54 = vsel %vm273_vm1, %v1019_v35, %v1247_v52  ;;  %v2125_v35 = vpack.c.bf16 %v1546_v34, %v1545_v33  ;;  %vm1626_vm1 = vcmask 25600  }
 0x687   :  { %v1251_v53 = vpop.permute.xlu1 %1250 }
 0x688   :  { %v1258_v55 = vsel %vm855_vm3, %v1257_v54, %v1251_v53 }
 0x68b   :  { %v1255_v56 = vpop.permute.xlu0 %1254 }
 0x68c   :  { %v1260_v58 = vsel %vm1259_vm5, %v1258_v55, %v1255_v56 }
 0x68d   :  { %1930 = vmatmul.mubr.f32.vlgmr.msra.gmra.mrb[4].mxu1 %v1260_v58 }
 0x68e   :  { %2002 = vmatprep.mubr.msk.f32.mxu1 %vm2368_vm9, %v2369_v0  ;;  %2108 = vmatpush3.bf16.msra.mxu1 %v2107_v21 }
 0x68f   :  { %2109 = vmatprep.subr.bf16.mxu1 %v2367_v57 }
 0x692   :  { %2111 = vmatpush3.bf16.msra.mxu1 %v2110_v23 }
 0x693   :  { %2112 = vmatprep.subr.bf16.mxu1 %v2367_v57 }
 0x696   :  { %2114 = vmatpush3.bf16.msra.mxu1 %v2113_v28 }
 0x697   :  { %2115 = vmatprep.subr.bf16.mxu1 %v2367_v57 }
 0x69a   :  { %2117 = vmatpush3.bf16.msra.mxu1 %v2116_v15 }
 0x69b   :  { %2118 = vmatprep.subr.bf16.mxu1 %v2367_v57 }
 0x69e   :  { %2120 = vmatpush3.bf16.msra.mxu1 %v2119_v26 }
 0x69f   :  { %2121 = vmatprep.subr.bf16.mxu1 %v2367_v57 }
 0x6a2   :  { %2123 = vmatpush3.bf16.msra.mxu1 %v2122_v32 }
 0x6a3   :  { %2124 = vmatprep.subr.bf16.mxu1 %v2367_v57 }
 0x6a6   :  { %2126 = vmatpush3.bf16.msra.mxu1 %v2125_v35 }
 0x6a7   :  { %2127 = vmatprep.subr.bf16.mxu1 %v2367_v57 }
 0x6aa   :  { %2129 = vmatpush3.bf16.msra.mxu1 %v2128_v43 }
 0x760   :  { %v1350_v4 = vpop.f32.mrb[4].mxu1 }
 0x761   :  { %v1351_v1 = vadd.f32 %v1665_v62, %v1350_v4  ;;  %v1931_v6 = vpop.f32.mrb[5].mxu1 }
 0x763   :  { %v1354_v8 = vmax.f32 %v1351_v1, 0.0 }
 0x765   :  { %1949 = vmatmul.mubr.msk.f32.vlgmr.msra.gmra.mrb[24].mxu0 %vm855_vm3, %v1354_v8 }
 0x766   :  { %2096 = vmatpush3.bf16.msra.mxu0 %v2095_v7  ;;  %1967 = vmatprep.mubr.msk.f32.mxu0 %vm2368_vm9, %v2369_v0  ;;  %v1450_v0 = vld [vmem:[%s2821_s10 + $0x30] sm:$0xff] }
 0x767   :  { %2097 = vmatprep.subr.bf16.mxu0 %v2367_v57  ;;  %v2104_v17 = vpack.c.bf16 %v1451_v14, %v1450_v0 }
 0x76a   :  { %2099 = vmatpush3.bf16.msra.mxu0 %v2098_v10 }
 0x76b   :  { %2100 = vmatprep.subr.bf16.mxu0 %v2367_v57 }
 0x76e   :  { %2102 = vmatpush3.bf16.msra.mxu0 %v2101_v13 }
 0x76f   :  { %2103 = vmatprep.subr.bf16.mxu0 %v2367_v57 }
 0x772   :  { %2105 = vmatpush3.bf16.msra.mxu0 %v2104_v17 }
 0x838   :  { %v1439_v37 = vpop.f32.mrb[24].mxu0 }
 0x839   :  { %v1440_v38 = vadd.f32 %v1666_v36, %v1439_v37  ;;  %v1950_v39 = vpop.f32.mrb[25].mxu0 }
 0x83b   :  { %v1443_v40 = vmax.f32 %v1440_v38, 0.0 }
 0x83d   :  { %1968 = vmatmul.mubr.msk.f32.vlgmr.msra.gmra.mrb[26].mxu0 %vm855_vm3, %v1443_v40 }
 0x910   :  { %v1528_v45 = vpop.f32.mrb[26].mxu0 }
 0x911   :  { %v1529_v57 = vadd.f32 %v1668_v44, %v1528_v45  ;;  %v1969_v46 = vpop.f32.mrb[27].mxu0 }
 0x913   :  { %v1532_v47 = vmax.f32 %v1529_v57, 0.0 }
 0x915   :  { %2003 = vmatmul.mubr.f32.vlgmr.msra.gmra.mrb[6].mxu1 %v1532_v47 }
 0x9e8   :  { %v1622_v49 = vpop.f32.mrb[6].mxu1 }
 0x9e9   :  { %v1623_v50 = vadd.f32 %v1670_v48, %v1622_v49  ;;  %v2004_v51 = vpop.f32.mrb[7].mxu1 }
 0x9eb   :  { %1627 = vst.msk [vmem:[#allocation13] sm:$0x3] %vm1626_vm1, %v1623_v50 }
 0x9ec   :  { %2336 = shalt.err (!%p2333_p10)
}
 0x9ed   :  { %s2337_s2 = scalar_lea.hbm %s2825_s14, 32 }
 0x9ee   :  { %p2338_p11 = scmp.ne.s32.totalorder %s2825_s14, %s2337_s2  ;;  %p2341_p12 = scmp.lt.u32.totalorder %s2337_s2, %s2825_s14 }
 0x9f0   :  { %p2343_p13 = pnand %p2341_p12, %p2338_p11 }
 0x9f2   :  { %2346 = shalt.err (!%p2343_p13)
}
 0x9f3   :  { %1637 = dma.vmem_to_hbm [thread:$0]  %s1635_s8, 32, %s2825_s14, [#allocation4]  }
 0x9f4   :  { %2355 = dma.done.wait [#allocation4], 32  }
 0x9f5   :  { %2356 = vsyncadd [#allocation4], 4294967264 }
 0x9f6   :  { %1641 = vsyncpa [#allocation3], 1 }
 0x9f7   :  { %1642 = vsyncpa [#allocation6], 1 }
 0x9f8   :  { %1643 = vsyncpa [#allocation9], 1 }
 0x9f9   :  { %1644 = vsyncpa [#allocation12], 1 }
 0x9fa   :  { %1645 = vsyncpa [#allocation4], 1 }

</bundles_post_ra>
